<compile_context>
chip_gen: v7x
topology: tpu7x:2x2x1
jax: 0.10.0
libtpu: 0.0.40
codegen_flags: <defaults>
</compile_context>

<pallas_src>
import functools

import jax
import jax.numpy as jnp
from jax.experimental import pallas as pl
from jax.experimental.pallas import tpu as pltpu


# ---------------------------------------------------------------------------
# Stage A1: adaptive average pools (tiled, streaming)
# ---------------------------------------------------------------------------
def coordatt_pool_kernel(x_ref, ehb_ref, ewb_ref, xh_ref, xw_ref, *, inv_w, inv_h):
    # x_ref:   (1, c_blk, s_blk) lane-dense block of x viewed as (N, C, H*W)
    # ehb_ref: (s_blk, h_blk) 0/1 selection: ehb[s, j] = 1 iff s // W == j
    # ewb_ref: (s_blk, W)     0/1 selection: ewb[s, w] = 1 iff s %  W == w
    # xh_ref:  (1, 1, c_blk, h_blk) pooled-over-W means for this h block (f32)
    # xw_ref:  (1, c_blk, W)        pooled-over-H means, accumulated across hi
    hi = pl.program_id(2)
    xb = x_ref[0]

    # pooled over W for the rows of this tile: complete per tile.
    ph = jnp.dot(xb, ehb_ref[...], preferred_element_type=jnp.float32)
    xh_ref[0, 0] = (ph * inv_w).astype(xh_ref.dtype)

    # pooled over H: accumulate across h-blocks in the resident output block.
    @pl.when(hi == 0)
    def _():
        xw_ref[...] = jnp.zeros_like(xw_ref)

    xw_ref[0] += jnp.dot(xb, ewb_ref[...], preferred_element_type=jnp.float32)

    @pl.when(hi == pl.num_programs(2) - 1)
    def _():
        xw_ref[0] = xw_ref[0] * inv_h


# ---------------------------------------------------------------------------
# Stage A2: per-batch attention vectors  a_h (C, H), a_w (C, W)
# ---------------------------------------------------------------------------
def coordatt_attn_kernel(xh_ref, xw_ref, w1_ref, wh_ref, ww_ref, bias_ref,
                         ah_ref, aw_ref):
    mip = w1_ref.shape[0]
    oup = wh_ref.shape[0]

    b1 = bias_ref[0:mip, 0:1]       # conv1 bias with BN folded in
    bh = bias_ref[0:oup, 1:2]       # conv_h bias
    bw = bias_ref[0:oup, 2:3]       # conv_w bias

    # conv1 (1x1, BN folded) applied to the two pooled tensors separately.
    y_h = jnp.dot(w1_ref[...], xh_ref[0], preferred_element_type=jnp.float32) + b1
    y_w = jnp.dot(w1_ref[...], xw_ref[0], preferred_element_type=jnp.float32) + b1

    # h_swish: y * relu6(y + 3) / 6
    y_h = y_h * jnp.clip(y_h + 3.0, 0.0, 6.0) * (1.0 / 6.0)
    y_w = y_w * jnp.clip(y_w + 3.0, 0.0, 6.0) * (1.0 / 6.0)

    a_h = jax.nn.sigmoid(
        jnp.dot(wh_ref[...], y_h, preferred_element_type=jnp.float32) + bh)
    a_w = jax.nn.sigmoid(
        jnp.dot(ww_ref[...], y_w, preferred_element_type=jnp.float32) + bw)

    # emit in the input dtype (bf16 for bf16 inputs) for the gating stage
    ah_ref[0] = a_h.astype(ah_ref.dtype)
    aw_ref[0] = a_w.astype(aw_ref.dtype)


# ---------------------------------------------------------------------------
# Stage B (path 1): lane-dense matmul-expansion gate (general W)
# ---------------------------------------------------------------------------
def coordatt_gate_flat_kernel(x_ref, ah_ref, aw_ref, ew_ref, o_ref, eh_scr, *, h_blk):
    # x_ref/o_ref: (1, c_blk, s_blk) lane-dense blocks of x viewed as (N, C, H*W)
    # ah_ref: (1, c_blk, H);  aw_ref: (1, c_blk, W)
    # ew_ref: (W, s_blk) 0/1 expansion for a_w (constant across the grid)
    # eh_scr: (H, s_blk) expansion for a_h; rebuilt only when the inner channel
    #         index is 0 (hi is the next-outer grid axis) and reused across ci.
    hi = pl.program_id(1)
    ci = pl.program_id(2)
    H = ah_ref.shape[2]
    W = aw_ref.shape[2]
    s_blk = x_ref.shape[2]

    @pl.when(ci == 0)
    def _():
        h_row = jax.lax.broadcasted_iota(jnp.int32, (H, s_blk), 0)
        s_lane = jax.lax.broadcasted_iota(jnp.int32, (H, s_blk), 1)
        lo = (h_row - hi * h_blk) * W
        eh_scr[...] = jnp.where((s_lane >= lo) & (s_lane < lo + W),
                                1.0, 0.0).astype(eh_scr.dtype)

    # gate[c, s] = a_h[c, hi*h_blk + s // W] * a_w[c, s % W]
    gate = (jnp.dot(ah_ref[0], eh_scr[...], preferred_element_type=jnp.float32) *
            jnp.dot(aw_ref[0], ew_ref[...], preferred_element_type=jnp.float32))

    # multiply in f32, single cast at the store (v5e has no bf16 VALUs)
    o_ref[0] = (x_ref[0] * gate).astype(o_ref.dtype)


# ---------------------------------------------------------------------------
# Stage B (path 2): no-matmul broadcast gate (W % 128 == 0, lane-dense anyway)
# ---------------------------------------------------------------------------
def coordatt_gate_bcast_kernel(x_ref, ah_ref, aw_ref, o_ref):
    # x_ref/o_ref: (1, c_blk, h_blk, W)
    # ah_ref:      (1, 1, c_blk, h_blk)  (a_h pre-tiled on the host)
    # aw_ref:      (1, c_blk, W)
    ah = ah_ref[0, 0].astype(jnp.float32)        # (c_blk, h_blk)
    aw = aw_ref[0].astype(jnp.float32)           # (c_blk, W)
    o_ref[0] = (x_ref[0] * ah[:, :, None] * aw[:, None, :]).astype(o_ref.dtype)


# ---------------------------------------------------------------------------
# Generation-aware VMEM budgeting and block selection
# ---------------------------------------------------------------------------
def _vmem_capacity():
    try:
        info = pltpu.get_tpu_info()
        cap = getattr(info, "vmem_capacity_bytes", None)
        if cap:
            return int(cap)
    except Exception:
        pass
    return 64 << 20  # conservative default: v7x per-TensorCore VMEM


def _pick_c_block(C, cap):
    cap = max(8, cap)
    if C <= cap:
        return C
    top = cap - (cap % 8)
    for d in range(top, 7, -8):
        if C % d == 0:
            return d
    # TODO(synk): use a pl.cdiv grid with masked channel tails when C has no
    # multiple-of-8 divisor; falling back to full C can exceed the VMEM budget.
    return C


def _pick_h_block_flat(H, W, max_lanes):
    # lane-dense (h*W)-wide blocks: need (h*W) % 128 == 0 unless h == H
    if H * W <= max_lanes:
        return H
    for h in range(min(H, max(1, max_lanes // W)), 0, -1):
        if H % h == 0 and (h * W) % 128 == 0:
            return h
    return H


def _pick_h_block_bcast(H, W, max_lanes):
    # (.., h_blk, W) blocks: need h_blk % 8 == 0 unless h_blk == H
    if H * W <= max_lanes:
        return H
    for h in range(min(H, max(1, max_lanes // W)), 0, -1):
        if H % h == 0 and h % 8 == 0:
            return h
    return H


def _pool_bytes(c_blk, h_blk, H, W, isz):
    s_blk = h_blk * W
    return (2 * c_blk * s_blk * isz              # x blocks (double-buffered)
            + 2 * s_blk * (h_blk + W) * isz      # ehb + ewb constants
            + 4 * c_blk * (h_blk + W) * 4        # pooled f32 output blocks
            + 2 * c_blk * max(h_blk, W) * 4)     # matmul result temporaries


def _gate_flat_bytes(c_blk, h_blk, H, W, isz):
    s_blk = h_blk * W
    return (4 * c_blk * s_blk * isz              # x in + out (double-buffered)
            + 4 * c_blk * (H + W) * isz          # a_h / a_w blocks
            + 2 * W * s_blk * isz                # ew constant
            + H * s_blk * isz                    # eh scratch
            + 2 * c_blk * s_blk * 4)             # f32 gate / product temporaries


def _gate_bcast_bytes(c_blk, h_blk, H, W, isz):
    s_blk = h_blk * W
    return (4 * c_blk * s_blk * isz
            + 4 * c_blk * (H + W) * isz
            + 2 * c_blk * s_blk * 4)


def _pick_blocks(C, H, W, isz, budget, bytes_fn, h_picker):
    for cap_c in (256, 128, 64, 32, 16, 8):
        for max_lanes in (16384, 8192, 4096, 2048, 1024, 512, 256, 128):
            c_blk = _pick_c_block(C, cap_c)
            h_blk = h_picker(H, W, max_lanes)
            if bytes_fn(c_blk, h_blk, H, W, isz) <= budget:
                return c_blk, h_blk
    return _pick_c_block(C, 8), h_picker(H, W, 128)


# ---------------------------------------------------------------------------
# Wrapper
# ---------------------------------------------------------------------------
def coord_att(x, params, *, c_block=None, h_block=None):
    """CoordAtt forward. x: (N, C, H, W); params: see init_params."""
    N, C, H, W = x.shape
    S = H * W
    mm_dtype = x.dtype                       # matmul / attention-vector dtype
    isz = jnp.dtype(x.dtype).itemsize

    w1, b1, gamma, beta, mean, var, wh, bh, ww, bw = (
        params["w1"], params["b1"], params["gamma"], params["beta"],
        params["mean"], params["var"], params["wh"], params["bh"],
        params["ww"], params["bw"])
    mip = w1.shape[0]
    oup = wh.shape[0]
    assert oup == C, "CoordAtt gating requires oup == input channels"

    # ---- fold eval-mode BatchNorm into conv1 (host side, zero cost) ----
    eps = 1e-5
    scale = gamma * jax.lax.rsqrt(var + eps)          # (mip, 1)
    w1f = (scale * w1).astype(jnp.float32)            # (mip, C)
    b1f = (b1 - mean) * scale + beta                  # (mip, 1)

    # ---- pack the per-channel bias vectors into a single block ----
    P = max(mip, oup)
    bias_pack = jnp.zeros((P, 3), jnp.float32)
    bias_pack = bias_pack.at[:mip, 0].set(b1f[:, 0])
    bias_pack = bias_pack.at[:oup, 1].set(bh[:, 0])
    bias_pack = bias_pack.at[:oup, 2].set(bw[:, 0])

    # ---- generation-aware VMEM budget ----
    cap = _vmem_capacity()
    vmem_limit = int(max(min(cap - (8 << 20), 120 << 20), 32 << 20))
    budget = int(vmem_limit * 0.7)

    use_bcast = (W % 128 == 0)

    def _check_blocks(cb, hb, bcast):
        assert C % cb == 0 and (cb % 8 == 0 or cb == C), (cb, C)
        assert H % hb == 0, (hb, H)
        if bcast:
            assert hb % 8 == 0 or hb == H, (hb, H)
        else:
            assert (hb * W) % 128 == 0 or hb == H, (hb, W)

    x3 = x.reshape(N, C, S)     # lane-dense view: spatial on the lane axis

    # ------------------------- Stage A1: pooling -------------------------
    cp_blk, hp_blk = _pick_blocks(C, H, W, isz, budget, _pool_bytes,
                                  _pick_h_block_flat)
    if c_block is not None:
        cp_blk = c_block
    if h_block is not None:
        hp_blk = h_block
    _check_blocks(cp_blk, hp_blk, bcast=False)
    sp_blk = hp_blk * W
    n_hblk = H // hp_blk

    sidx = jnp.arange(sp_blk, dtype=jnp.int32)
    ehb = (sidx[:, None] // W ==
           jnp.arange(hp_blk, dtype=jnp.int32)[None, :]).astype(mm_dtype)   # (sp_blk, hp_blk)
    ewb = (sidx[:, None] % W ==
           jnp.arange(W, dtype=jnp.int32)[None, :]).astype(mm_dtype)        # (sp_blk, W)

    pool_kernel = functools.partial(coordatt_pool_kernel,
                                    inv_w=1.0 / W, inv_h=1.0 / H)
    xh_part, x_w = pl.pallas_call(
        pool_kernel,
        out_shape=(jax.ShapeDtypeStruct((N, n_hblk, C, hp_blk), jnp.float32),
                   jax.ShapeDtypeStruct((N, C, W), jnp.float32)),
        grid_spec=pltpu.PrefetchScalarGridSpec(
            num_scalar_prefetch=0,
            grid=(N, C // cp_blk, n_hblk),
            in_specs=[
                pl.BlockSpec((1, cp_blk, sp_blk), lambda n, ci, hi: (n, ci, hi)),
                pl.BlockSpec((sp_blk, hp_blk), lambda n, ci, hi: (0, 0)),
                pl.BlockSpec((sp_blk, W), lambda n, ci, hi: (0, 0)),
            ],
            out_specs=[
                pl.BlockSpec((1, 1, cp_blk, hp_blk), lambda n, ci, hi: (n, hi, ci, 0)),
                pl.BlockSpec((1, cp_blk, W), lambda n, ci, hi: (n, ci, 0)),
            ],
        ),
        compiler_params=pltpu.CompilerParams(
            dimension_semantics=("parallel", "parallel", "arbitrary"),
            vmem_limit_bytes=vmem_limit),
    )(x3, ehb, ewb)

    # tiny layout plumbing: (N, n_hblk, C, hp_blk) -> (N, C, H)
    x_h = xh_part.transpose(0, 2, 1, 3).reshape(N, C, H)

    # --------------------- Stage A2: attention vectors --------------------
    # TODO(synk): for N == 1 on v7x this tiny stage runs on a single
    # TensorCore; its cost is negligible (C*(H+W) work) so it is left as-is.
    a_h, a_w = pl.pallas_call(
        coordatt_attn_kernel,
        out_shape=(jax.ShapeDtypeStruct((N, oup, H), mm_dtype),
                   jax.ShapeDtypeStruct((N, oup, W), mm_dtype)),
        grid_spec=pltpu.PrefetchScalarGridSpec(
            num_scalar_prefetch=0,
            grid=(N,),
            in_specs=[
                pl.BlockSpec((1, C, H), lambda n: (n, 0, 0)),
                pl.BlockSpec((1, C, W), lambda n: (n, 0, 0)),
                pl.BlockSpec((mip, C), lambda n: (0, 0)),
                pl.BlockSpec((oup, mip), lambda n: (0, 0)),
                pl.BlockSpec((oup, mip), lambda n: (0, 0)),
                pl.BlockSpec((P, 3), lambda n: (0, 0)),
            ],
            out_specs=[pl.BlockSpec((1, oup, H), lambda n: (n, 0, 0)),
                       pl.BlockSpec((1, oup, W), lambda n: (n, 0, 0))],
        ),
        compiler_params=pltpu.CompilerParams(
            dimension_semantics=("parallel",),
            vmem_limit_bytes=vmem_limit),
    )(x_h, x_w, w1f, wh, ww, bias_pack)

    # -------------------------- Stage B: gating ---------------------------
    if use_bcast:
        cg_blk, hg_blk = _pick_blocks(C, H, W, isz, budget, _gate_bcast_bytes,
                                      _pick_h_block_bcast)
    else:
        cg_blk, hg_blk = _pick_blocks(C, H, W, isz, budget, _gate_flat_bytes,
                                      _pick_h_block_flat)
    if c_block is not None:
        cg_blk = c_block
    if h_block is not None:
        hg_blk = h_block
    _check_blocks(cg_blk, hg_blk, bcast=use_bcast)

    if use_bcast:
        # a_h pre-tiled to (N, H//hg, C, hg) so no dynamic lane slicing in-kernel
        a_h_t = a_h.reshape(N, C, H // hg_blk, hg_blk).transpose(0, 2, 1, 3)
        out = pl.pallas_call(
            coordatt_gate_bcast_kernel,
            out_shape=jax.ShapeDtypeStruct((N, C, H, W), x.dtype),
            grid_spec=pltpu.PrefetchScalarGridSpec(
                num_scalar_prefetch=0,
                grid=(N, H // hg_blk, C // cg_blk),
                in_specs=[
                    pl.BlockSpec((1, cg_blk, hg_blk, W), lambda n, hi, ci: (n, ci, hi, 0)),
                    pl.BlockSpec((1, 1, cg_blk, hg_blk), lambda n, hi, ci: (n, hi, ci, 0)),
                    pl.BlockSpec((1, cg_blk, W), lambda n, hi, ci: (n, ci, 0)),
                ],
                out_specs=pl.BlockSpec((1, cg_blk, hg_blk, W),
                                       lambda n, hi, ci: (n, ci, hi, 0)),
            ),
            compiler_params=pltpu.CompilerParams(
                dimension_semantics=("parallel", "parallel", "parallel"),
                vmem_limit_bytes=vmem_limit),
        )(x, a_h_t, a_w)
        return out

    sg_blk = hg_blk * W
    sg = jnp.arange(sg_blk, dtype=jnp.int32)
    ew = (jnp.arange(W, dtype=jnp.int32)[:, None] == (sg % W)[None, :]).astype(mm_dtype)

    gate_kernel = functools.partial(coordatt_gate_flat_kernel, h_blk=hg_blk)
    out3 = pl.pallas_call(
        gate_kernel,
        out_shape=jax.ShapeDtypeStruct((N, C, S), x.dtype),
        grid_spec=pltpu.PrefetchScalarGridSpec(
            num_scalar_prefetch=0,
            grid=(N, H // hg_blk, C // cg_blk),
            in_specs=[
                pl.BlockSpec((1, cg_blk, sg_blk), lambda n, hi, ci: (n, ci, hi)),
                pl.BlockSpec((1, cg_blk, H), lambda n, hi, ci: (n, ci, 0)),
                pl.BlockSpec((1, cg_blk, W), lambda n, hi, ci: (n, ci, 0)),
                pl.BlockSpec((W, sg_blk), lambda n, hi, ci: (0, 0)),
            ],
            out_specs=pl.BlockSpec((1, cg_blk, sg_blk), lambda n, hi, ci: (n, ci, hi)),
            scratch_shapes=[pltpu.VMEM((H, sg_blk), mm_dtype)],
        ),
        compiler_params=pltpu.CompilerParams(
            dimension_semantics=("parallel", "parallel", "arbitrary"),
            vmem_limit_bytes=vmem_limit),
    )(x3, a_h, a_w, ew)
    return out3.reshape(N, C, H, W)


# ---------------------------------------------------------------------------
# Params + pure-JAX reference
# ---------------------------------------------------------------------------
def init_params(key, inp, oup, reduction=32):
    mip = max(8, inp // reduction)
    ks = jax.random.split(key, 6)
    scale = 0.1
    return {
        "w1":    scale * jax.random.normal(ks[0], (mip, inp), jnp.float32),
        "b1":    scale * jax.random.normal(ks[1], (mip, 1), jnp.float32),
        "gamma": 1.0 + scale * jax.random.normal(ks[2], (mip, 1), jnp.float32),
        "beta":  scale * jax.random.normal(ks[3], (mip, 1), jnp.float32),
        # eval-mode BatchNorm running statistics (deterministic, non-trivial)
        "mean":  0.05 * jnp.arange(mip, dtype=jnp.float32).reshape(mip, 1),
        "var":   1.0 + 0.1 * jnp.arange(mip, dtype=jnp.float32).reshape(mip, 1),
        "wh":    scale * jax.random.normal(ks[4], (oup, mip), jnp.float32),
        "bh":    jnp.zeros((oup, 1), jnp.float32),
        "ww":    scale * jax.random.normal(ks[5], (oup, mip), jnp.float32),
        "bw":    jnp.zeros((oup, 1), jnp.float32),
    }


def coord_att_ref(x, p):
    """Pure-JAX reference (mirrors the PyTorch forward, eval-mode BN)."""
    x_h = jnp.mean(x, axis=3)                       # (N, C, H)
    x_w = jnp.mean(x, axis=2)                       # (N, C, W)
    H = x.shape[2]
    y = jnp.concatenate([x_h, x_w], axis=2)         # (N, C, H+W)
    y = jnp.einsum("mc,ncs->nms", p["w1"], y) + p["b1"][None]
    y = (y - p["mean"][None]) * (p["gamma"][None] * jax.lax.rsqrt(p["var"][None] + 1e-5)) + p["beta"][None]
    y = y * jnp.clip(y + 3.0, 0.0, 6.0) / 6.0
    yh, yw = y[:, :, :H], y[:, :, H:]
    a_h = jax.nn.sigmoid(jnp.einsum("om,nms->nos", p["wh"], yh) + p["bh"][None])
    a_w = jax.nn.sigmoid(jnp.einsum("om,nms->nos", p["ww"], yw) + p["bw"][None])
    return x * a_h[:, :, :, None] * a_w[:, :, None, :]


if __name__ == "__main__":
    key = jax.random.PRNGKey(0)

    def run_case(k, N, C, H, W, dtype, atol, rtol, **block_kw):
        kx, kp = jax.random.split(k)
        x = jax.random.normal(kx, (N, C, H, W), jnp.float32)
        params = init_params(kp, C, C, reduction=32)
        out = jax.block_until_ready(coord_att(x.astype(dtype), params, **block_kw))
        ref = coord_att_ref(x, params)
        assert out.shape == (N, C, H, W)
        err = float(jnp.max(jnp.abs(out.astype(jnp.float32) - ref)))
        assert jnp.allclose(out.astype(jnp.float32), ref, atol=atol, rtol=rtol), err

    k1, k2, k3, k4 = jax.random.split(key, 4)
    # small spec-consistent shape, default blocks (flat matmul-expansion gate)
    run_case(k1, 2, 4, 16, 16, jnp.float32, 1e-4, 1e-4)
    # multi-block grids: exercises pooled accumulation + eh reuse across ci
    run_case(k2, 2, 16, 32, 16, jnp.float32, 1e-4, 1e-4, c_block=8, h_block=8)
    # W % 128 == 0: lane-dense no-matmul broadcast gate path, multiple h blocks
    run_case(k3, 1, 8, 16, 128, jnp.float32, 1e-4, 1e-4, h_block=8)
    # bf16 inputs: bf16 MXU / bf16 attention-vector path end-to-end
    run_case(k4, 2, 4, 16, 16, jnp.bfloat16, 5e-2, 5e-2)

    print("KERNEL_OK")
</pallas_src>

<mosaic_0001>
module attributes {stable_mosaic.version = 11 : i64} {
  func.func @coordatt_pool_kernel(%arg0: i32, %arg1: i32, %arg2: i32, %arg3: memref<1x4x256xf32, #tpu.memory_space<vmem>>, %arg4: memref<256x16xf32, #tpu.memory_space<vmem>>, %arg5: memref<256x16xf32, #tpu.memory_space<vmem>>, %arg6: memref<1x1x4x16xf32, #tpu.memory_space<vmem>>, %arg7: memref<1x4x16xf32, #tpu.memory_space<vmem>>) attributes {dimension_semantics = [#tpu.dimension_semantics<parallel>, #tpu.dimension_semantics<parallel>, #tpu.dimension_semantics<arbitrary>], iteration_bounds = array<i64: 2, 1, 1>, scalar_prefetch = 0 : i64, scratch_operands = 0 : i64, tpu.core_type = #tpu.core_type<tc>, window_params = [{transform_indices = @transform_0, window_bounds = array<i64: 1, 4, 256>}, {pipeline_mode = #tpu.pipeline_mode<synchronous>, transform_indices = @transform_1, window_bounds = array<i64: 256, 16>}, {pipeline_mode = #tpu.pipeline_mode<synchronous>, transform_indices = @transform_2, window_bounds = array<i64: 256, 16>}, {transform_indices = @transform_3, window_bounds = array<i64: 1, 1, 4, 16>}, {transform_indices = @transform_4, window_bounds = array<i64: 1, 4, 16>}]} {
    %c0 = arith.constant 0 : index
    %c0_0 = arith.constant 0 : index
    %c0_1 = arith.constant 0 : index
    %0 = vector.load %arg3[%c0, %c0_0, %c0_1] : memref<1x4x256xf32, #tpu.memory_space<vmem>>, vector<1x4x256xf32>
    %1 = vector.shape_cast %0 : vector<1x4x256xf32> to vector<4x256xf32>
    %c0_2 = arith.constant 0 : index
    %c0_3 = arith.constant 0 : index
    %2 = vector.load %arg4[%c0_2, %c0_3] : memref<256x16xf32, #tpu.memory_space<vmem>>, vector<256x16xf32>
    %cst = arith.constant dense<0.000000e+00> : vector<4x16xf32>
    %3 = tpu.matmul %1, %2, %cst {dimension_numbers = #tpu.dot_dimension_numbers<[1], [0], [0], [1], [0, 0, 1, 1], [], []>} : vector<4x256xf32>, vector<256x16xf32>, vector<4x16xf32> -> vector<4x16xf32>
    %cst_4 = arith.constant 6.250000e-02 : f32
    %4 = vector.broadcast %cst_4 : f32 to vector<4x16xf32>
    %5 = arith.mulf %3, %4 : vector<4x16xf32>
    %c0_5 = arith.constant 0 : index
    %c0_6 = arith.constant 0 : index
    %c0_7 = arith.constant 0 : index
    %c0_8 = arith.constant 0 : index
    %6 = vector.load %arg6[%c0_5, %c0_6, %c0_7, %c0_8] : memref<1x1x4x16xf32, #tpu.memory_space<vmem>>, vector<1x1x4x16xf32>
    %7 = vector.shape_cast %6 : vector<1x1x4x16xf32> to vector<4x16xf32>
    %8 = vector.shape_cast %5 : vector<4x16xf32> to vector<1x1x4x16xf32>
    tpu.vector_store %arg6[%c0_5, %c0_6, %c0_7, %c0_8], %8 {strides = array<i32>} : memref<1x1x4x16xf32, #tpu.memory_space<vmem>>, vector<1x1x4x16xf32>,
    %c0_i32 = arith.constant 0 : i32
    %9 = arith.cmpi eq, %arg2, %c0_i32 : i32
    %10 = arith.extui %9 : i1 to i32
    %c0_i32_9 = arith.constant 0 : i32
    %11 = arith.cmpi ne, %10, %c0_i32_9 : i32
    scf.if %11 {
      %cst_21 = arith.constant 0.000000e+00 : f32
      %23 = vector.broadcast %cst_21 : f32 to vector<1x4x16xf32>
      %c0_22 = arith.constant 0 : index
      %c0_23 = arith.constant 0 : index
      %c0_24 = arith.constant 0 : index
      %24 = vector.load %arg7[%c0_22, %c0_23, %c0_24] : memref<1x4x16xf32, #tpu.memory_space<vmem>>, vector<1x4x16xf32>
      tpu.vector_store %arg7[%c0_22, %c0_23, %c0_24], %23 {strides = array<i32>} : memref<1x4x16xf32, #tpu.memory_space<vmem>>, vector<1x4x16xf32>,
    } else {
    }
    %c0_10 = arith.constant 0 : index
    %c0_11 = arith.constant 0 : index
    %c0_12 = arith.constant 0 : index
    %12 = vector.load %arg7[%c0_10, %c0_11, %c0_12] : memref<1x4x16xf32, #tpu.memory_space<vmem>>, vector<1x4x16xf32>
    %13 = vector.shape_cast %12 : vector<1x4x16xf32> to vector<4x16xf32>
    %c0_13 = arith.constant 0 : index
    %c0_14 = arith.constant 0 : index
    %14 = vector.load %arg5[%c0_13, %c0_14] : memref<256x16xf32, #tpu.memory_space<vmem>>, vector<256x16xf32>
    %cst_15 = arith.constant dense<0.000000e+00> : vector<4x16xf32>
    %15 = tpu.matmul %1, %14, %cst_15 {dimension_numbers = #tpu.dot_dimension_numbers<[1], [0], [0], [1], [0, 0, 1, 1], [], []>} : vector<4x256xf32>, vector<256x16xf32>, vector<4x16xf32> -> vector<4x16xf32>
    %16 = arith.addf %13, %15 : vector<4x16xf32>
    %c0_16 = arith.constant 0 : index
    %c0_17 = arith.constant 0 : index
    %c0_18 = arith.constant 0 : index
    %17 = vector.load %arg7[%c0_16, %c0_17, %c0_18] : memref<1x4x16xf32, #tpu.memory_space<vmem>>, vector<1x4x16xf32>
    %18 = vector.shape_cast %17 : vector<1x4x16xf32> to vector<4x16xf32>
    %19 = vector.shape_cast %16 : vector<4x16xf32> to vector<1x4x16xf32>
    tpu.vector_store %arg7[%c0_16, %c0_17, %c0_18], %19 {strides = array<i32>} : memref<1x4x16xf32, #tpu.memory_space<vmem>>, vector<1x4x16xf32>,
    %c0_i32_19 = arith.constant 0 : i32
    %20 = arith.cmpi eq, %arg2, %c0_i32_19 : i32
    %21 = arith.extui %20 : i1 to i32
    %c0_i32_20 = arith.constant 0 : i32
    %22 = arith.cmpi ne, %21, %c0_i32_20 : i32
    scf.if %22 {
      %c0_21 = arith.constant 0 : index
      %c0_22 = arith.constant 0 : index
      %c0_23 = arith.constant 0 : index
      %23 = vector.load %arg7[%c0_21, %c0_22, %c0_23] : memref<1x4x16xf32, #tpu.memory_space<vmem>>, vector<1x4x16xf32>
      %24 = vector.shape_cast %23 : vector<1x4x16xf32> to vector<4x16xf32>
      %cst_24 = arith.constant 6.250000e-02 : f32
      %25 = vector.broadcast %cst_24 : f32 to vector<4x16xf32>
      %26 = arith.mulf %24, %25 : vector<4x16xf32>
      %c0_25 = arith.constant 0 : index
      %c0_26 = arith.constant 0 : index
      %c0_27 = arith.constant 0 : index
      %27 = vector.load %arg7[%c0_25, %c0_26, %c0_27] : memref<1x4x16xf32, #tpu.memory_space<vmem>>, vector<1x4x16xf32>
      %28 = vector.shape_cast %27 : vector<1x4x16xf32> to vector<4x16xf32>
      %29 = vector.shape_cast %26 : vector<4x16xf32> to vector<1x4x16xf32>
      tpu.vector_store %arg7[%c0_25, %c0_26, %c0_27], %29 {strides = array<i32>} : memref<1x4x16xf32, #tpu.memory_space<vmem>>, vector<1x4x16xf32>,
    } else {
    }
    return
  }
  func.func @transform_0(%arg0: i32, %arg1: i32, %arg2: i32) -> (i32, i32, i32) {
    %c0_i32 = arith.constant 0 : i32
    return %arg0, %arg1, %arg2 : i32, i32, i32
  }
  func.func @transform_1(%arg0: i32, %arg1: i32, %arg2: i32) -> (i32, i32) {
    %c0_i32 = arith.constant 0 : i32
    %c0_i32_0 = arith.constant 0 : i32
    %c0_i32_1 = arith.constant 0 : i32
    return %c0_i32, %c0_i32_0 : i32, i32
  }
  func.func @transform_2(%arg0: i32, %arg1: i32, %arg2: i32) -> (i32, i32) {
    %c0_i32 = arith.constant 0 : i32
    %c0_i32_0 = arith.constant 0 : i32
    %c0_i32_1 = arith.constant 0 : i32
    return %c0_i32, %c0_i32_0 : i32, i32
  }
  func.func @transform_3(%arg0: i32, %arg1: i32, %arg2: i32) -> (i32, i32, i32, i32) {
    %c0_i32 = arith.constant 0 : i32
    %c0_i32_0 = arith.constant 0 : i32
    return %arg0, %arg2, %arg1, %c0_i32 : i32, i32, i32, i32
  }
  func.func @transform_4(%arg0: i32, %arg1: i32, %arg2: i32) -> (i32, i32, i32) {
    %c0_i32 = arith.constant 0 : i32
    %c0_i32_0 = arith.constant 0 : i32
    return %arg0, %arg1, %c0_i32 : i32, i32, i32
  }
}

</mosaic_0001>

<bundles_post_ra>
// kernel: tpu_custom_call.1
= control target key start
LH: loop header
LB: loop body
LE: loop exit
PB: predicated region body
PF: predicated region fallthrough
CT: control target
= control target key end

     0   :  { %10 = vsyncpa [#allocation3], 0  ;;  %s1351_s0 = inlined_call_operand.vmem [shape: f32[2,4,256], index: 0, kind: input, shape index: {}]   ;;  %s1352_s1 = inlined_call_operand.vmem [shape: f32[256,16], index: 1, kind: input, shape index: {}]   ;;  %s1353_s2 = inlined_call_operand.vmem [shape: f32[256,16], index: 2, kind: input, shape index: {}]   ;;  %s1354_s3 = inlined_call_operand.hbm [shape: f32[2,1,4,16], index: 3, kind: output, shape index: {0}]   ;;  %s1355_s4 = inlined_call_operand.hbm [shape: f32[2,4,16], index: 4, kind: output, shape index: {1}]  }
   0x1   :  { %12 = vsyncpa [#allocation3 + $0x1], 0 }
   0x2   :  { %13 = vsyncpa [#allocation5], 0 }
   0x3   :  { %15 = vsyncpa [#allocation5 + $0x1], 0  ;;  %s991_s15 = smov 0   ;;  %s993_s16 = smov 0  }
   0x4   :  { %s995_s17 = smov 0   ;;  %s997_s18 = smov 0  }
   0x5   :  { %s999_s19 = smov 0   ;;  %s1001_s20 = smov 0  }
   0x6 LB: > { %s639_s21 = sadd.s32 4294967295, %s961_s20   ;;  %s640_s22 = sadd.s32 4294967294, %s961_s20   ;;  %s961_s20 = sphi %s1001_s20, %s21_s20   ;;  %s957_s19 = sphi %s999_s19, %s1362_s19   ;;  %s953_s18 = sphi %s997_s18, %s1361_s18   ;;  %s949_s17 = sphi %s995_s17, %s1360_s17   ;;  %s945_s16 = sphi %s993_s16, %s1359_s16   ;;  %s941_s15 = sphi %s991_s15, %s1358_s15  }
   0x7   : > { %s40_s23 = sadd.s32 1, %s957_s19  ;;  %s123_s24 = sadd.s32 1, %s949_s17 }
   0x8   : > { %p42_p0 = scmp.ge.s32.totalorder %s40_s23, 2  ;;  %p133_p1 = scmp.ne.s32.totalorder %s949_s17, %s945_s16 }
   0x9   : > { %p134_p2 = scmp.eq.s32.totalorder %s639_s21, 1  ;;  %p139_p3 = scmp.ne.s32.totalorder %s945_s16, %s941_s15 }
   0xa   : > { %s1364_s23 = smov (%p42_p0, %s40_s23), 0  ;;  %p140_p5 = scmp.eq.s32.totalorder %s640_s22, 1 }
   0xb   : > { %p1031_p4 = por %p134_p2, %p133_p1  ;;  %s116_s26 = ssub.s32 %s957_s19, %s1364_s23 }
   0xc   : > { %p643_p6 = scmp.ge.s32.totalorder %s961_s20, 1  ;;  %p121_p7 = scmp.eq.s32.totalorder %s116_s26, 0 }
   0xd   : > { %p1038_p8 = por %p140_p5, %p139_p3  ;;  %p209_p9 = scmp.lt.s32.totalorder %s961_s20, 3 }
   0xe   : > { %s1044_s28 = scalar_select %p121_p7, %s949_s17, %s123_s24  }
   0xf   : > { %p210_p10 = pnand %p643_p6, %p209_p9 }
  0x10   : > { %v393_v0 = vld [vmem:[%s1353_s2 + $0x80] sm:$0xff] (!%p210_p10)  ;;  %v394_v1 = vld [vmem:[%s1353_s2 + $0x88] sm:$0xff] (!%p210_p10)  ;;  %v395_v5 = vld [vmem:[%s1353_s2 + $0x90] sm:$0xff] (!%p210_p10)  ;;  %p249_p11 = scmp.lt.s32.totalorder (!%p210_p10), %s953_s18, 1  ;;  %s1249_s11 = sand.u32 (!%p210_p10), 1, %s945_s16   ;;  %vm369_vm0 = vcmask (!%p210_p10), 125952  }
  0x11   : > { %213 = sbr.rel (%p210_p10) target bundleno = 310 (0x136), region = 32  ;;  %v377_v2 = vld [vmem:[%s1353_s2] sm:$0xff] (!%p210_p10)  ;;  %v757_v3 = vpack.c.bf16 (!%p210_p10), %v394_v1, %v393_v0  ;;  %v378_v4 = vld [vmem:[%s1353_s2 + $0x8] sm:$0xff] (!%p210_p10)  ;;  %v396_v6 = vld [vmem:[%s1353_s2 + $0x98] sm:$0xff] (!%p210_p10)  ;;  %s644_s12 = sshll.u32 (!%p210_p10), %s1249_s11, 2 }
  0x12   : > { %v759_v7 = vpack.c.bf16 (!%p210_p10), %v378_v4, %v377_v2  ;;  %v761_v8 = vpack.c.bf16 (!%p210_p10), %v396_v6, %v395_v5  ;;  %v379_v9 = vld [vmem:[%s1353_s2 + $0x10] sm:$0xff] (!%p210_p10)  ;;  %v380_v10 = vld [vmem:[%s1353_s2 + $0x18] sm:$0xff] (!%p210_p10)  ;;  %v397_v11 = vld [vmem:[%s1353_s2 + $0xa0] sm:$0xff] (!%p210_p10)  ;;  %s1252_s13 = scalar_lea.vmem (!%p210_p10), [#allocation4], %s644_s12  ;;  %s650_s14 = sshll.u32 (!%p210_p10), %s953_s18, 6 }
  0x13   : > { %758 = vmatprep.subr.bf16.mxu1 (!%p210_p10), %v757_v3  ;;  %v398_v12 = vld [vmem:[%s1353_s2 + $0xa8] sm:$0xff] (!%p210_p10)  ;;  %v279_v13 = vld [vmem:[%s1352_s1 + $0x80] sm:$0xff] (!%p210_p10)  ;;  %v763_v15 = vpack.c.bf16 (!%p210_p10), %v380_v10, %v379_v9  ;;  %v399_v22 = vld [vmem:[%s1353_s2 + $0xb0] sm:$0xff] (!%p210_p10)  ;;  %s240_s21 = scalar_lea.vmem (!%p210_p10), [#allocation2], %s644_s12  ;;  %s1265_s24 = scalar_lea.hbm (!%p210_p10), %s1354_s3, %s650_s14 }
  0x14   : > { %v280_v14 = vld [vmem:[%s1352_s1 + $0x88] sm:$0xff] (!%p210_p10)  ;;  %760 = vmatpush3.bf16.msra.mxu1 (!%p210_p10), %v759_v7  ;;  %v381_v17 = vld [vmem:[%s1353_s2 + $0x20] sm:$0xff] (!%p210_p10)  ;;  %v765_v19 = vpack.c.bf16 (!%p210_p10), %v398_v12, %v397_v11  ;;  %v400_v24 = vld [vmem:[%s1353_s2 + $0xb8] sm:$0xff] (!%p210_p10)  ;;  %s488_s26 = scalar_lea.sflag (!%p210_p10), [#allocation3], %s1249_s11  ;;  %s964_s5 = smov (!%p210_p10), [#allocation2]  }
  0x15   : > { %v725_v16 = vpack.c.bf16 (!%p210_p10), %v280_v14, %v279_v13  ;;  %v263_v18 = vld [vmem:[%s1352_s1] sm:$0xff] (!%p210_p10)  ;;  %762 = vmatprep.subr.bf16.mxu1 (!%p210_p10), %v761_v8  ;;  %v382_v20 = vld [vmem:[%s1353_s2 + $0x28] sm:$0xff] (!%p210_p10)  ;;  %v281_v25 = vld [vmem:[%s1352_s1 + $0x90] sm:$0xff] (!%p210_p10)  ;;  %v769_v34 = vpack.c.bf16 (!%p210_p10), %v400_v24, %v399_v22  ;;  %s855_s6 = sshll.u32 (!%p210_p10), %s964_s5, 4  ;;  %s856_s6 = int_to_ptr.vmem [resolvable:$false] %s855_s6 }
  0x16   : > { %v264_v21 = vld [vmem:[%s1352_s1 + $0x8] sm:$0xff] (!%p210_p10)  ;;  %v282_v26 = vld [vmem:[%s1352_s1 + $0x98] sm:$0xff] (!%p210_p10)  ;;  %v265_v28 = vld [vmem:[%s1352_s1 + $0x10] sm:$0xff] (!%p210_p10)  ;;  %v767_v30 = vpack.c.bf16 (!%p210_p10), %v382_v20, %v381_v17  ;;  %s857_s7 = scalar_lea.vmem (!%p210_p10), %s856_s6, 128 }
  0x17   : > { %726 = vmatprep.subr.bf16.mxu0 (!%p210_p10), %v725_v16  ;;  %v727_v23 = vpack.c.bf16 (!%p210_p10), %v264_v21, %v263_v18  ;;  %v729_v27 = vpack.c.bf16 (!%p210_p10), %v282_v26, %v281_v25  ;;  %v266_v29 = vld [vmem:[%s1352_s1 + $0x18] sm:$0xff] (!%p210_p10)  ;;  %v383_v31 = vld [vmem:[%s1353_s2 + $0x30] sm:$0xff] (!%p210_p10)  ;;  %v283_v33 = vld [vmem:[%s1352_s1 + $0xa0] sm:$0xff] (!%p210_p10) }
  0x18   : > { %764 = vmatpush3.bf16.msra.mxu1 %v763_v15  ;;  %v731_v32 = vpack.c.bf16 %v266_v29, %v265_v28  ;;  %s1122_s29 = scalar_select %p249_p11, %s953_s18, 1  ;;  %v384_v35 = vld [vmem:[%s1353_s2 + $0x38] sm:$0xff]  ;;  %v401_v36 = vld [vmem:[%s1353_s2 + $0xc0] sm:$0xff]  ;;  %v284_v37 = vld [vmem:[%s1352_s1 + $0xa8] sm:$0xff] }
  0x19   : > { %728 = vmatpush3.bf16.msra.mxu0 %v727_v23  ;;  %766 = vmatprep.subr.bf16.mxu1 %v765_v19  ;;  %v402_v38 = vld [vmem:[%s1353_s2 + $0xc8] sm:$0xff]  ;;  %v733_v39 = vpack.c.bf16 %v284_v37, %v283_v33  ;;  %v267_v40 = vld [vmem:[%s1352_s1 + $0x20] sm:$0xff]  ;;  %v285_v42 = vld [vmem:[%s1352_s1 + $0xb0] sm:$0xff]  ;;  %v771_v44 = vpack.c.bf16 %v384_v35, %v383_v31 }
  0x1a   : > { %730 = vmatprep.subr.bf16.mxu0 %v729_v27  ;;  %v268_v41 = vld [vmem:[%s1352_s1 + $0x28] sm:$0xff]  ;;  %v286_v43 = vld [vmem:[%s1352_s1 + $0xb8] sm:$0xff]  ;;  %v385_v45 = vld [vmem:[%s1353_s2 + $0x40] sm:$0xff]  ;;  %s654_s9 = sshll.u32 %s1122_s29, 3  ;;  %v773_v48 = vpack.c.bf16 %v402_v38, %v401_v36  ;;  %s522_s29 = sshll.u32 %s1252_s13, 4  ;;  %s1303_s29 = int_to_ptr.vmem [resolvable:$true] %s522_s29 }
  0x1b   : > { %v386_v46 = vld [vmem:[%s1353_s2 + $0x48] sm:$0xff]  ;;  %v735_v47 = vpack.c.bf16 %v268_v41, %v267_v40  ;;  %v403_v49 = vld [vmem:[%s1353_s2 + $0xd0] sm:$0xff]  ;;  %v737_v50 = vpack.c.bf16 %v286_v43, %v285_v42  ;;  %v270_v52 = vld [vmem:[%s1352_s1 + $0x38] sm:$0xff]  ;;  %s260_s8 = scalar_lea.vmem %s1351_s0, %s654_s9  ;;  %s508_s9 = sshll.u32 %s240_s21, 4  ;;  %s1267_s9 = int_to_ptr.vmem [resolvable:$true] %s508_s9 }
  0x1c   : > { %768 = vmatpush3.bf16.msra.mxu1 %v767_v30  ;;  %v269_v51 = vld [vmem:[%s1352_s1 + $0x30] sm:$0xff]  ;;  %v404_v53 = vld [vmem:[%s1353_s2 + $0xd8] sm:$0xff]  ;;  %v287_v54 = vld [vmem:[%s1352_s1 + $0xc0] sm:$0xff]  ;;  %v775_v56 = vpack.c.bf16 %v386_v46, %v385_v45  ;;  %s851_s30 = scalar_lea.vmem %s1267_s9, 64  ;;  %p858_p1 = scmp.lt.s32.totalorder %s1267_s9, %s856_s6 }
  0x1d   : > { %732 = vmatpush3.bf16.msra.mxu0 %v731_v32  ;;  %770 = vmatprep.subr.bf16.mxu1 %v769_v34  ;;  %v288_v55 = vld [vmem:[%s1352_s1 + $0xc8] sm:$0xff]  ;;  %v387_v57 = vld [vmem:[%s1353_s2 + $0x50] sm:$0xff]  ;;  %v388_v58 = vld [vmem:[%s1353_s2 + $0x58] sm:$0xff]  ;;  %v739_v59 = vpack.c.bf16 %v270_v52, %v269_v51  ;;  %v777_v61 = vpack.c.bf16 %v404_v53, %v403_v49  ;;  %v963_v34 = vmov 0.0   ;;  %p852_p12 = scmp.ne.s32.totalorder %s1267_s9, %s851_s30  ;;  %p859_p2 = scmp.lt.s32.totalorder %s857_s7, %s851_s30 }
  0x1e   : > { %734 = vmatprep.subr.bf16.mxu0 %v733_v39  ;;  %v405_v60 = vld [vmem:[%s1353_s2 + $0xe0] sm:$0xff]  ;;  %v406_v62 = vld [vmem:[%s1353_s2 + $0xe8] sm:$0xff]  ;;  %v741_v63 = vpack.c.bf16 %v288_v55, %v287_v54  ;;  %v289_v2 = vld [vmem:[%s1352_s1 + $0xd0] sm:$0xff]  ;;  %v779_v6 = vpack.c.bf16 %v388_v58, %v387_v57  ;;  %375 = vst.msk [vmem:[%s1252_s13] sm:$0xf] %vm369_vm0, %v963_v34 }
  0x1f   : > { %v271_v0 = vld [vmem:[%s1352_s1 + $0x40] sm:$0xff]  ;;  %v272_v1 = vld [vmem:[%s1352_s1 + $0x48] sm:$0xff]  ;;  %v290_v3 = vld [vmem:[%s1352_s1 + $0xd8] sm:$0xff]  ;;  %v781_v10 = vpack.c.bf16 %v406_v62, %v405_v60  ;;  %p853_p13 = pnand %p852_p12, %p1031_p4  ;;  %p860_p3 = por %p859_p2, %p858_p1 }
  0x20   : > { %772 = vmatpush3.bf16.msra.mxu1 %v771_v44  ;;  %v262_v4 = vld [vmem:[%s260_s8] sm:$0xff]  ;;  %v390_v8 = vld [vmem:[%s1353_s2 + $0x68] sm:$0xff]  ;;  %v743_v9 = vpack.c.bf16 %v272_v1, %v271_v0  ;;  %v407_v11 = vld [vmem:[%s1353_s2 + $0xf0] sm:$0xff]  ;;  %v745_v12 = vpack.c.bf16 %v290_v3, %v289_v2 }
  0x21   : > { %736 = vmatpush3.bf16.msra.mxu0 %v735_v47  ;;  %774 = vmatprep.subr.bf16.mxu1 %v773_v48  ;;  %v296_v5 = vcombine.high %v262_v4, %v262_v4  ;;  %v389_v7 = vld [vmem:[%s1353_s2 + $0x60] sm:$0xff]  ;;  %v273_v13 = vld [vmem:[%s1352_s1 + $0x50] sm:$0xff]  ;;  %v274_v14 = vld [vmem:[%s1352_s1 + $0x58] sm:$0xff]  ;;  %p854_p0 = pneg %p853_p13 }
  0x22   : > { %738 = vmatprep.subr.bf16.mxu0 %v737_v50  ;;  %v408_v15 = vld [vmem:[%s1353_s2 + $0xf8] sm:$0xff]  ;;  %v291_v16 = vld [vmem:[%s1352_s1 + $0xe0] sm:$0xff]  ;;  %v292_v17 = vld [vmem:[%s1352_s1 + $0xe8] sm:$0xff]  ;;  %v783_v18 = vpack.c.bf16 %v390_v8, %v389_v7  ;;  %v747_v20 = vpack.c.bf16 %v274_v14, %v273_v13 }
  0x23   : > { %473 = vmatprep.mubr.f32.mxu1 %v296_v5  ;;  %362 = vmatprep.mubr.f32.mxu0 %v296_v5  ;;  %v391_v19 = vld [vmem:[%s1353_s2 + $0x70] sm:$0xff]  ;;  %v785_v21 = vpack.c.bf16 %v408_v15, %v407_v11  ;;  %v392_v22 = vld [vmem:[%s1353_s2 + $0x78] sm:$0xff]  ;;  %v749_v23 = vpack.c.bf16 %v292_v17, %v291_v16  ;;  %v275_v24 = vld [vmem:[%s1352_s1 + $0x60] sm:$0xff]  ;;  %p861_p5 = pnand %p860_p3, %p854_p0 }
  0x24   : > { %776 = vmatpush3.bf16.msra.mxu1 %v775_v56  ;;  %v276_v25 = vld [vmem:[%s1352_s1 + $0x68] sm:$0xff]  ;;  %v293_v26 = vld [vmem:[%s1352_s1 + $0xf0] sm:$0xff]  ;;  %v294_v27 = vld [vmem:[%s1352_s1 + $0xf8] sm:$0xff]  ;;  %v787_v28 = vpack.c.bf16 %v392_v22, %v391_v19 }
  0x25   : > { %740 = vmatpush3.bf16.msra.mxu0 %v739_v59  ;;  %778 = vmatprep.subr.bf16.mxu1 %v777_v61  ;;  %v751_v29 = vpack.c.bf16 %v276_v25, %v275_v24  ;;  %v753_v30 = vpack.c.bf16 %v294_v27, %v293_v26  ;;  %v277_v31 = vld [vmem:[%s1352_s1 + $0x70] sm:$0xff]  ;;  %v278_v32 = vld [vmem:[%s1352_s1 + $0x78] sm:$0xff]  ;;  %v376_v36 = vld [vmem:[%s1252_s13] sm:$0xf] }
  0x26   : > { %742 = vmatprep.subr.bf16.mxu0 %v741_v63  ;;  %v755_v33 = vpack.c.bf16 %v278_v32, %v277_v31 }
  0x28   : > { %780 = vmatpush3.bf16.msra.mxu1 %v779_v6 }
  0x29   : > { %744 = vmatpush3.bf16.msra.mxu0 %v743_v9  ;;  %782 = vmatprep.subr.bf16.mxu1 %v781_v10 }
  0x2a   : > { %746 = vmatprep.subr.bf16.mxu0 %v745_v12 }
  0x2c   : > { %784 = vmatpush3.bf16.msra.mxu1 %v783_v18 }
  0x2d   : > { %748 = vmatpush3.bf16.msra.mxu0 %v747_v20  ;;  %786 = vmatprep.subr.bf16.mxu1 %v785_v21 }
  0x2e   : > { %750 = vmatprep.subr.bf16.mxu0 %v749_v23 }
  0x30   : > { %788 = vmatpush3.bf16.msra.mxu1 %v787_v28 }
  0x31   : > { %752 = vmatpush3.bf16.msra.mxu0 %v751_v29 }
  0x32   : > { %754 = vmatprep.subr.bf16.mxu0 %v753_v30 }
  0x33   : > { %474 = vmatmul.mubr.f32.vlgmr.msra.gmra.mrb[0].mxu1 %v262_v4 }
  0x35   : > { %756 = vmatpush3.bf16.msra.mxu0 %v755_v33 }
  0x38   : > { %363 = vmatmul.mubr.f32.vlgmr.msra.gmra.mrb[0].mxu0 %v262_v4 }
 0x106   : > { %v722_v35 = vpop.f32.mrb[0].mxu1 }
 0x107   : > { %v723_v37 = vpop.f32.mrb[1].mxu1 }
 0x108   : > { %v724_v38 = vadd.f32 %v723_v37, %v722_v35 }
 0x10a   : > { %v479_v39 = vadd.f32 %v724_v38, %v376_v36 }
 0x10b   : > { %v687_v40 = vpop.f32.mrb[0].mxu0 }
 0x10c   : > { %v688_v41 = vpop.f32.mrb[1].mxu0  ;;  %480 = vst.msk [vmem:[%s1252_s13] sm:$0xf] %vm369_vm0, %v479_v39 }
 0x10d   : > { %v689_v42 = vadd.f32 %v688_v41, %v687_v40 }
 0x10f   : > { %v368_v43 = vmul.f32 0.0625, %v689_v42 }
 0x111   : > { %370 = vst.msk [vmem:[%s240_s21] sm:$0xf] %vm369_vm0, %v368_v43 }
 0x112   : > { %864 = shalt.err (!%p861_p5)
}
 0x113   : > { %s865_s10 = scalar_lea.hbm %s1265_s24, 64  ;;  %s869_s8 = scalar_lea.hbm %s1354_s3, 128 }
 0x114   : > { %p866_p6 = scmp.ne.s32.totalorder %s1265_s24, %s865_s10  ;;  %p870_p10 = scmp.lt.u32.totalorder %s1265_s24, %s1354_s3 }
 0x115   : > { %p871_p11 = scmp.lt.u32.totalorder %s869_s8, %s865_s10  ;;  %p873_p13 = scmp.lt.u32.totalorder %s865_s10, %s1265_s24 }
 0x116   : > { %p867_p7 = pnand %p866_p6, %p1031_p4 }
 0x117   : > { %p872_p12 = por %p871_p11, %p870_p10 }
 0x118   : > { %p868_p9 = pneg %p867_p7 }
 0x119   : > { %p874_p0 = por %p873_p13, %p872_p12 }
 0x11b   : > { %p875_p1 = pnand %p874_p0, %p868_p9 }
 0x11d   : > { %878 = shalt.err (!%p875_p1)
}
 0x11e   : > { %789 = dma.vmem_to_hbm [thread:$0]  (%p1031_p4), %s1267_s9, 64, %s1265_s24, %s488_s26   ;;  %v484_v44 = vld [vmem:[%s1252_s13] sm:$0xf] }
 0x11f   : > { %v485_v45 = vmul.f32 0.0625, %v484_v44  ;;  %s1299_s7 = scalar_lea.hbm %s1355_s4, %s650_s14  ;;  %s493_s10 = scalar_lea.sflag [#allocation5], %s1249_s11 }
 0x120   : > { %s879_s12 = scalar_lea.vmem %s1303_s29, 64  ;;  %s965_s18 = smov [#allocation4]  }
 0x121   : > { %486 = vst.msk [vmem:[%s1252_s13] sm:$0xf] %vm369_vm0, %v485_v45  ;;  %p880_p2 = scmp.ne.s32.totalorder %s1303_s29, %s879_s12  ;;  %s883_s9 = sshll.u32 %s965_s18, 4  ;;  %s884_s9 = int_to_ptr.vmem [resolvable:$false] %s883_s9 }
 0x122   : > { %s885_s24 = scalar_lea.vmem %s884_s9, 128  ;;  %p886_p6 = scmp.lt.s32.totalorder %s1303_s29, %s884_s9 }
 0x123   : > { %p881_p3 = pnand %p880_p2, %p1031_p4  ;;  %p887_p7 = scmp.lt.s32.totalorder %s885_s24, %s879_s12 }
 0x125   : > { %p882_p5 = pneg %p881_p3  ;;  %p888_p9 = por %p887_p7, %p886_p6 }
 0x127   : > { %p889_p10 = pnand %p888_p9, %p882_p5 }
 0x129   : > { %892 = shalt.err (!%p889_p10)
}
 0x12a   : > { %s893_s11 = scalar_lea.hbm %s1299_s7, 64  ;;  %s897_s26 = scalar_lea.hbm %s1355_s4, 128 }
 0x12b   : > { %p894_p11 = scmp.ne.s32.totalorder %s1299_s7, %s893_s11  ;;  %p898_p0 = scmp.lt.u32.totalorder %s1299_s7, %s1355_s4 }
 0x12c   : > { %p899_p1 = scmp.lt.u32.totalorder %s897_s26, %s893_s11  ;;  %p901_p3 = scmp.lt.u32.totalorder %s893_s11, %s1299_s7 }
 0x12d   : > { %p895_p12 = pnand %p894_p11, %p1031_p4 }
 0x12e   : > { %p900_p2 = por %p899_p1, %p898_p0 }
 0x12f   : > { %p896_p13 = pneg %p895_p12 }
 0x130   : > { %p902_p5 = por %p901_p3, %p900_p2 }
 0x132   : > { %p903_p6 = pnand %p902_p5, %p896_p13 }
 0x134   : > { %906 = shalt.err (!%p903_p6)
}
 0x135   : > { %790 = dma.vmem_to_hbm [thread:$0]  (%p1031_p4), %s1303_s29, 64, %s1299_s7, %s493_s10  }
 0x136 PF: > { %p800_p7 = scmp.ge.s32.totalorder %s961_s20, 2  ;;  %s534_s22 = sand.u32 1, %s941_s15  }
 0x137   : > { %s535_s5 = scalar_lea.sflag [#allocation3], %s534_s22 }
 0x138   : > { %p794_p9 = pnand %p800_p7, %p1038_p8 }
 0x13a   : > { %932 = dma.done.wait (!%p794_p9), %s535_s5, 64  }
 0x13b   : > { %934 = vsyncadd (!%p794_p9), %s535_s5, 4294967232  ;;  %s544_s30 = scalar_lea.sflag [#allocation5], %s534_s22 }
 0x13c   : > { %936 = dma.done.wait (!%p794_p9), %s544_s30, 64  }
 0x13d   : > { %938 = vsyncadd (!%p794_p9), %s544_s30, 4294967232  ;;  %s21_s20 = sadd.s32 1, %s961_s20   ;;  %s1358_s15 = smov %s945_s16 }
 0x13e   : > { %p18_p10 = scmp.ge.s32.totalorder %s21_s20, 4   ;;  %s1359_s16 = smov %s949_s17 }
 0x13f   : > { %s1360_s17 = smov %s1044_s28  ;;  %s1361_s18 = smov %s957_s19 }
 0x140   : > { %s1362_s19 = smov %s1364_s23  ;;  %20 = sbr.rel (!%p18_p10) target bundleno = 6 (0x6), region = 92 }
 0x147   :  { %549 = vsyncpa [#allocation3], 1 }
 0x148   :  { %551 = vsyncpa [#allocation3 + $0x1], 1 }
 0x149   :  { %552 = vsyncpa [#allocation5], 1 }
 0x14a   :  { %554 = vsyncpa [#allocation5 + $0x1], 1 }

</bundles_post_ra>
